<compile_context>
chip_gen: v7x
topology: tpu7x:2x2x1
jax: 0.10.0
libtpu: 0.0.40
codegen_flags: <defaults>
</compile_context>

<pallas_src>
import functools

import jax
import jax.numpy as jnp
import numpy as np
from jax.experimental import pallas as pl
from jax.experimental.pallas import tpu as pltpu


# ----------------------------- Pallas kernel --------------------------------

def _to_f32(x):
    # No-op for f32 inputs; single widening cast for bf16/f16 inputs (v5e has
    # no bf16 VPU path, and the f32 accumulate is needed for accuracy anyway).
    return x if x.dtype == jnp.float32 else x.astype(jnp.float32)


def _pose_dis_kernel(sup_p_ref, sup_g_ref, sup_w_ref,
                     cons_p_ref, unsup_g_ref, unsup_w_ref,
                     pose_ref, cons_ref, *, scale):
    """Fused weighted-MSE for both loss terms, one grid step.

    sup_p_ref / sup_g_ref / cons_p_ref / unsup_g_ref : (B*J, HW) VMEM blocks
    sup_w_ref / unsup_w_ref                          : (B*J, 1)  VMEM blocks
    pose_ref / cons_ref                              : (1, 1)    scalar outputs
    """
    # --- supervised pose loss ---
    d = _to_f32(sup_p_ref[...]) - _to_f32(sup_g_ref[...])       # (BJ, HW)
    wd = d * _to_f32(sup_w_ref[...])                            # broadcast (BJ,1)
    pose_ref[...] = jnp.sum(wd * wd, axis=(0, 1), keepdims=True) * scale

    # --- consistency loss (target already stop_gradient'ed in the wrapper) ---
    d2 = _to_f32(cons_p_ref[...]) - _to_f32(unsup_g_ref[...])   # (BJ, HW)
    wd2 = d2 * _to_f32(unsup_w_ref[...])
    cons_ref[...] = jnp.sum(wd2 * wd2, axis=(0, 1), keepdims=True) * scale


# ----------------------------- PoseDisLoss wrapper ---------------------------

def pose_dis_loss(output, target, target_weight, use_target_weight=True):
    """PoseDisLoss.forward.

    output        : tuple (sup_ht, _, unsup_ht, _, cons_ht, _)  each (B, J, H, W)
    target        : tuple (sup_target, unsup_target)
    target_weight : tuple (sup_target_weight, unsup_target_weight)  each (B, J, 1)
    """
    sup_ht, _, unsup_ht, _, cons_ht, _ = output
    sup_target, _unsup_target = target
    sup_tw, unsup_tw = target_weight

    B, J, H, W = sup_ht.shape
    HW = H * W
    BJ = B * J

    # Contiguous, copy-free reshapes — no transpose, no extra HBM pass.
    sup_p = sup_ht.reshape(BJ, HW)
    sup_g = sup_target.reshape(BJ, HW)
    cons_p = cons_ht.reshape(BJ, HW)
    unsup_g = jax.lax.stop_gradient(unsup_ht).reshape(BJ, HW)

    if use_target_weight:
        w_sup = sup_tw.reshape(BJ, 1)
        w_unsup = unsup_tw.reshape(BJ, 1)
    else:
        w_sup = jnp.ones((BJ, 1), sup_ht.dtype)
        w_unsup = jnp.ones((BJ, 1), sup_ht.dtype)

    # 0.5 * mean over (B*HW), averaged over J joints == 0.5 / (J*B*HW) * total SSE.
    scale = 0.5 / float(J * B * HW)

    elem_bytes = jnp.dtype(sup_ht.dtype).itemsize
    cost = pl.CostEstimate(
        flops=2 * 4 * BJ * HW,                         # sub, mul-w, square, sum  x2 terms
        transcendentals=0,
        bytes_accessed=4 * BJ * HW * elem_bytes + 2 * BJ * elem_bytes + 2 * 4,
    )

    loss_pose, loss_cons = pl.pallas_call(
        functools.partial(_pose_dis_kernel, scale=scale),
        out_shape=(jax.ShapeDtypeStruct((1, 1), jnp.float32),
                   jax.ShapeDtypeStruct((1, 1), jnp.float32)),
        grid=(1,),
        in_specs=[
            pl.BlockSpec((BJ, HW), lambda i: (0, 0)),
            pl.BlockSpec((BJ, HW), lambda i: (0, 0)),
            pl.BlockSpec((BJ, 1), lambda i: (0, 0)),
            pl.BlockSpec((BJ, HW), lambda i: (0, 0)),
            pl.BlockSpec((BJ, HW), lambda i: (0, 0)),
            pl.BlockSpec((BJ, 1), lambda i: (0, 0)),
        ],
        out_specs=(pl.BlockSpec((1, 1), lambda i: (0, 0)),
                   pl.BlockSpec((1, 1), lambda i: (0, 0))),
        compiler_params=pltpu.CompilerParams(
            dimension_semantics=("arbitrary",)),
        cost_estimate=cost,
    )(sup_p, sup_g, w_sup, cons_p, unsup_g, w_unsup)

    loss_pose = loss_pose[0, 0]
    loss_cons = loss_cons[0, 0]

    # TODO(synk): get_max_preds_tensor(unsup_ht) in the reference forward is dead
    # code (its preds/maxvals are never used), so it is not reproduced here.

    loss = loss_pose + loss_cons
    return loss, {"loss_pose": loss_pose, "loss_cons": loss_cons}


# ----------------------------- pure-JAX reference ----------------------------

def _joints_mse_ref(output, target, target_weight, use_target_weight=True):
    B, J, _, _ = output.shape
    p = output.reshape(B, J, -1)
    g = target.reshape(B, J, -1)
    loss = 0.0
    for idx in range(J):
        pj = p[:, idx]
        gj = g[:, idx]
        if use_target_weight:
            wj = target_weight[:, idx]          # (B, 1)
            pj = pj * wj
            gj = gj * wj
        loss += 0.5 * jnp.mean((pj - gj) ** 2)
    return loss / J


# ----------------------------------- main ------------------------------------

if __name__ == "__main__":
    # Small shapes consistent with the module: num_joints=24 (fixed in __init__),
    # heatmap 16x16, batch 2.
    B, J, H, W = 2, 24, 16, 16
    key = jax.random.PRNGKey(0)
    ks = jax.random.split(key, 8)

    sup_ht = jax.random.normal(ks[0], (B, J, H, W), jnp.float32)
    unsup_ht = jax.random.normal(ks[1], (B, J, H, W), jnp.float32)
    cons_ht = jax.random.normal(ks[2], (B, J, H, W), jnp.float32)
    sup_target = jax.random.uniform(ks[3], (B, J, H, W), jnp.float32)
    unsup_target = jax.random.uniform(ks[4], (B, J, H, W), jnp.float32)
    sup_tw = (jax.random.uniform(ks[5], (B, J, 1)) > 0.2).astype(jnp.float32)
    unsup_tw = (jax.random.uniform(ks[6], (B, J, 1)) > 0.2).astype(jnp.float32)

    outputs = (sup_ht, None, unsup_ht, None, cons_ht, None)
    targets = (sup_target, unsup_target)
    weights = (sup_tw, unsup_tw)

    loss, loss_dic = pose_dis_loss(outputs, targets, weights, use_target_weight=True)
    loss = jax.block_until_ready(loss)

    # correctness check vs. pure-JAX reference of the PyTorch semantics
    ref_pose = _joints_mse_ref(sup_ht, sup_target, sup_tw, True)
    ref_cons = _joints_mse_ref(cons_ht, unsup_ht, unsup_tw, True)
    ref_loss = ref_pose + ref_cons

    np.testing.assert_allclose(np.array(loss_dic["loss_pose"]), np.array(ref_pose),
                               rtol=1e-5, atol=1e-6)
    np.testing.assert_allclose(np.array(loss_dic["loss_cons"]), np.array(ref_cons),
                               rtol=1e-5, atol=1e-6)
    np.testing.assert_allclose(np.array(loss), np.array(ref_loss),
                               rtol=1e-5, atol=1e-6)

    print("KERNEL_OK")
</pallas_src>

<mosaic_0001>
module attributes {stable_mosaic.version = 11 : i64} {
  func.func @_pose_dis_kernel(%arg0: i32, %arg1: memref<48x256xf32, #tpu.memory_space<vmem>>, %arg2: memref<48x256xf32, #tpu.memory_space<vmem>>, %arg3: memref<48x1xf32, #tpu.memory_space<vmem>>, %arg4: memref<48x256xf32, #tpu.memory_space<vmem>>, %arg5: memref<48x256xf32, #tpu.memory_space<vmem>>, %arg6: memref<48x1xf32, #tpu.memory_space<vmem>>, %arg7: memref<1x1xf32, #tpu.memory_space<vmem>>, %arg8: memref<1x1xf32, #tpu.memory_space<vmem>>) attributes {dimension_semantics = [#tpu.dimension_semantics<arbitrary>], iteration_bounds = array<i64: 1>, scalar_prefetch = 0 : i64, scratch_operands = 0 : i64, tpu.core_type = #tpu.core_type<tc>, window_params = [{pipeline_mode = #tpu.pipeline_mode<synchronous>, transform_indices = @transform_0, window_bounds = array<i64: 48, 256>}, {pipeline_mode = #tpu.pipeline_mode<synchronous>, transform_indices = @transform_1, window_bounds = array<i64: 48, 256>}, {pipeline_mode = #tpu.pipeline_mode<synchronous>, transform_indices = @transform_2, window_bounds = array<i64: 48, 1>}, {pipeline_mode = #tpu.pipeline_mode<synchronous>, transform_indices = @transform_3, window_bounds = array<i64: 48, 256>}, {pipeline_mode = #tpu.pipeline_mode<synchronous>, transform_indices = @transform_4, window_bounds = array<i64: 48, 256>}, {pipeline_mode = #tpu.pipeline_mode<synchronous>, transform_indices = @transform_5, window_bounds = array<i64: 48, 1>}, {pipeline_mode = #tpu.pipeline_mode<synchronous>, transform_indices = @transform_6, window_bounds = array<i64: 1, 1>}, {pipeline_mode = #tpu.pipeline_mode<synchronous>, transform_indices = @transform_7, window_bounds = array<i64: 1, 1>}]} {
    %c0 = arith.constant 0 : index
    %c0_0 = arith.constant 0 : index
    %0 = vector.load %arg1[%c0, %c0_0] : memref<48x256xf32, #tpu.memory_space<vmem>>, vector<48x256xf32>
    %c0_1 = arith.constant 0 : index
    %c0_2 = arith.constant 0 : index
    %1 = vector.load %arg2[%c0_1, %c0_2] : memref<48x256xf32, #tpu.memory_space<vmem>>, vector<48x256xf32>
    %2 = arith.subf %0, %1 : vector<48x256xf32>
    %c0_3 = arith.constant 0 : index
    %c0_4 = arith.constant 0 : index
    %3 = vector.load %arg3[%c0_3, %c0_4] : memref<48x1xf32, #tpu.memory_space<vmem>>, vector<48x1xf32>
    %4 = vector.broadcast %3 : vector<48x1xf32> to vector<48x256xf32>
    %5 = arith.mulf %2, %4 : vector<48x256xf32>
    %6 = arith.mulf %5, %5 : vector<48x256xf32>
    %7 = vector.shape_cast %6 : vector<48x256xf32> to vector<1x48x256xf32>
    %cst = arith.constant dense<0.000000e+00> : vector<1xf32>
    %8 = vector.multi_reduction <add>, %7, %cst [1, 2] : vector<1x48x256xf32> to vector<1xf32>
    %9 = vector.shape_cast %8 : vector<1xf32> to vector<1x1x1xf32>
    %10 = vector.extract %9[0, 0, 0] : f32 from vector<1x1x1xf32>
    %11 = vector.broadcast %10 : f32 to vector<1x1xf32>
    %cst_5 = arith.constant 4.06901054E-5 : f32
    %12 = vector.broadcast %cst_5 : f32 to vector<1x1xf32>
    %13 = arith.mulf %11, %12 : vector<1x1xf32>
    %c0_6 = arith.constant 0 : index
    %c0_7 = arith.constant 0 : index
    %14 = vector.load %arg7[%c0_6, %c0_7] : memref<1x1xf32, #tpu.memory_space<vmem>>, vector<1x1xf32>
    tpu.vector_store %arg7[%c0_6, %c0_7], %13 {strides = array<i32>} : memref<1x1xf32, #tpu.memory_space<vmem>>, vector<1x1xf32>,
    %c0_8 = arith.constant 0 : index
    %c0_9 = arith.constant 0 : index
    %15 = vector.load %arg4[%c0_8, %c0_9] : memref<48x256xf32, #tpu.memory_space<vmem>>, vector<48x256xf32>
    %c0_10 = arith.constant 0 : index
    %c0_11 = arith.constant 0 : index
    %16 = vector.load %arg5[%c0_10, %c0_11] : memref<48x256xf32, #tpu.memory_space<vmem>>, vector<48x256xf32>
    %17 = arith.subf %15, %16 : vector<48x256xf32>
    %c0_12 = arith.constant 0 : index
    %c0_13 = arith.constant 0 : index
    %18 = vector.load %arg6[%c0_12, %c0_13] : memref<48x1xf32, #tpu.memory_space<vmem>>, vector<48x1xf32>
    %19 = vector.broadcast %18 : vector<48x1xf32> to vector<48x256xf32>
    %20 = arith.mulf %17, %19 : vector<48x256xf32>
    %21 = arith.mulf %20, %20 : vector<48x256xf32>
    %22 = vector.shape_cast %21 : vector<48x256xf32> to vector<1x48x256xf32>
    %cst_14 = arith.constant dense<0.000000e+00> : vector<1xf32>
    %23 = vector.multi_reduction <add>, %22, %cst_14 [1, 2] : vector<1x48x256xf32> to vector<1xf32>
    %24 = vector.shape_cast %23 : vector<1xf32> to vector<1x1x1xf32>
    %25 = vector.extract %24[0, 0, 0] : f32 from vector<1x1x1xf32>
    %26 = vector.broadcast %25 : f32 to vector<1x1xf32>
    %cst_15 = arith.constant 4.06901054E-5 : f32
    %27 = vector.broadcast %cst_15 : f32 to vector<1x1xf32>
    %28 = arith.mulf %26, %27 : vector<1x1xf32>
    %c0_16 = arith.constant 0 : index
    %c0_17 = arith.constant 0 : index
    %29 = vector.load %arg8[%c0_16, %c0_17] : memref<1x1xf32, #tpu.memory_space<vmem>>, vector<1x1xf32>
    tpu.vector_store %arg8[%c0_16, %c0_17], %28 {strides = array<i32>} : memref<1x1xf32, #tpu.memory_space<vmem>>, vector<1x1xf32>,
    return
  }
  func.func @transform_0(%arg0: i32) -> (i32, i32) {
    %c0_i32 = arith.constant 0 : i32
    %c0_i32_0 = arith.constant 0 : i32
    %c0_i32_1 = arith.constant 0 : i32
    return %c0_i32, %c0_i32_0 : i32, i32
  }
  func.func @transform_1(%arg0: i32) -> (i32, i32) {
    %c0_i32 = arith.constant 0 : i32
    %c0_i32_0 = arith.constant 0 : i32
    %c0_i32_1 = arith.constant 0 : i32
    return %c0_i32, %c0_i32_0 : i32, i32
  }
  func.func @transform_2(%arg0: i32) -> (i32, i32) {
    %c0_i32 = arith.constant 0 : i32
    %c0_i32_0 = arith.constant 0 : i32
    %c0_i32_1 = arith.constant 0 : i32
    return %c0_i32, %c0_i32_0 : i32, i32
  }
  func.func @transform_3(%arg0: i32) -> (i32, i32) {
    %c0_i32 = arith.constant 0 : i32
    %c0_i32_0 = arith.constant 0 : i32
    %c0_i32_1 = arith.constant 0 : i32
    return %c0_i32, %c0_i32_0 : i32, i32
  }
  func.func @transform_4(%arg0: i32) -> (i32, i32) {
    %c0_i32 = arith.constant 0 : i32
    %c0_i32_0 = arith.constant 0 : i32
    %c0_i32_1 = arith.constant 0 : i32
    return %c0_i32, %c0_i32_0 : i32, i32
  }
  func.func @transform_5(%arg0: i32) -> (i32, i32) {
    %c0_i32 = arith.constant 0 : i32
    %c0_i32_0 = arith.constant 0 : i32
    %c0_i32_1 = arith.constant 0 : i32
    return %c0_i32, %c0_i32_0 : i32, i32
  }
  func.func @transform_6(%arg0: i32) -> (i32, i32) {
    %c0_i32 = arith.constant 0 : i32
    %c0_i32_0 = arith.constant 0 : i32
    %c0_i32_1 = arith.constant 0 : i32
    return %c0_i32, %c0_i32_0 : i32, i32
  }
  func.func @transform_7(%arg0: i32) -> (i32, i32) {
    %c0_i32 = arith.constant 0 : i32
    %c0_i32_0 = arith.constant 0 : i32
    %c0_i32_1 = arith.constant 0 : i32
    return %c0_i32, %c0_i32_0 : i32, i32
  }
}

</mosaic_0001>

<bundles_post_ra>
// kernel: tpu_custom_call.1
= control target key start
LH: loop header
LB: loop body
LE: loop exit
PB: predicated region body
PF: predicated region fallthrough
CT: control target
= control target key end

     0   :  { %13 = vsyncpa [#allocation3], 0  ;;  %s675_s0 = inlined_call_operand.vmem [shape: f32[48,256], index: 0, kind: input, shape index: {}]   ;;  %s676_s1 = inlined_call_operand.hbm [shape: f32[48,256], index: 1, kind: input, shape index: {}]   ;;  %s677_s2 = inlined_call_operand.vmem [shape: f32[48,1], index: 2, kind: input, shape index: {}]   ;;  %s678_s3 = inlined_call_operand.hbm [shape: f32[48,256], index: 3, kind: input, shape index: {}]   ;;  %s679_s4 = inlined_call_operand.hbm [shape: f32[48,256], index: 4, kind: input, shape index: {}]   ;;  %s680_s5 = inlined_call_operand.vmem [shape: f32[48,1], index: 5, kind: input, shape index: {}]   ;;  %s681_s6 = inlined_call_operand.hbm [shape: f32[1,1], index: 6, kind: output, shape index: {0}]   ;;  %s682_s7 = inlined_call_operand.hbm [shape: f32[1,1], index: 7, kind: output, shape index: {1}]  }
   0x1   :  { %14 = vsyncpa [#allocation6], 0 }
   0x2   :  { %15 = vsyncpa [#allocation4], 0 }
   0x3   :  { %16 = vsyncpa [#allocation10], 0  ;;  %s469_s24 = smov [#allocation5]   ;;  %s470_s26 = smov [#allocation2]  }
   0x4   :  { %s38_s25 = sshll.u32 %s469_s24, 4  ;;  %s24_s27 = sshll.u32 %s470_s26, 4  ;;  %s39_s25 = int_to_ptr.vmem [resolvable:$true] %s38_s25  ;;  %s517_s27 = int_to_ptr.vmem [resolvable:$true] %s24_s27 }
   0x5   :  { %s351_s30 = scalar_lea.hbm %s678_s3, 1536 }
   0x6   :  { %p352_p0 = scmp.ne.s32.totalorder %s678_s3, %s351_s30  ;;  %p355_p1 = scmp.lt.u32.totalorder %s351_s30, %s678_s3 }
   0x8   :  { %p357_p2 = pnand %p355_p1, %p352_p0 }
   0xa   :  { %360 = shalt.err (!%p357_p2)
}
   0xb   :  { %s361_s12 = scalar_lea.vmem %s39_s25, 1536  ;;  %p366_p4 = scmp.lt.s32.totalorder %s39_s25, %s39_s25 }
   0xc   :  { %p362_p3 = scmp.ne.s32.totalorder %s39_s25, %s361_s12  ;;  %p367_p5 = scmp.lt.s32.totalorder %s361_s12, %s361_s12 }
   0xe   :  { %p368_p6 = por %p367_p5, %p366_p4 }
  0x10   :  { %p369_p7 = pnand %p368_p6, %p362_p3 }
  0x12   :  { %372 = shalt.err (!%p369_p7)
}
  0x13   :  { %s471_s13 = smov 256   ;;  %s472_s14 = smov 16  }
  0x14   :  { %44 = dma.hbm_to_vmem [thread:$0]  %s678_s3, 1536, %s39_s25, [#allocation6], %s471_s13, %s471_s13, %s472_s14  }
  0x15   :  { %s373_s19 = scalar_lea.hbm %s676_s1, 1536 }
  0x16   :  { %p374_p8 = scmp.ne.s32.totalorder %s676_s1, %s373_s19  ;;  %p377_p9 = scmp.lt.u32.totalorder %s373_s19, %s676_s1 }
  0x18   :  { %p379_p10 = pnand %p377_p9, %p374_p8 }
  0x1a   :  { %382 = shalt.err (!%p379_p10)
}
  0x1b   :  { %s383_s24 = scalar_lea.vmem %s517_s27, 1536  ;;  %p388_p12 = scmp.lt.s32.totalorder %s517_s27, %s517_s27 }
  0x1c   :  { %p384_p11 = scmp.ne.s32.totalorder %s517_s27, %s383_s24  ;;  %p389_p13 = scmp.lt.s32.totalorder %s383_s24, %s383_s24 }
  0x1e   :  { %p390_p0 = por %p389_p13, %p388_p12 }
  0x20   :  { %p391_p1 = pnand %p390_p0, %p384_p11 }
  0x22   :  { %394 = shalt.err (!%p391_p1)
}
  0x23   :  { %30 = dma.hbm_to_vmem [thread:$0]  %s676_s1, 1536, %s517_s27, [#allocation3], %s471_s13, %s471_s13, %s472_s14  }
  0x24   :  { %s473_s26 = smov [#allocation7]   ;;  %s395_s8 = scalar_lea.hbm %s679_s4, 1536 }
  0x25   :  { %s50_s28 = sshll.u32 %s473_s26, 4  ;;  %p396_p2 = scmp.ne.s32.totalorder %s679_s4, %s395_s8  ;;  %s51_s28 = int_to_ptr.vmem [resolvable:$true] %s50_s28 }
  0x26   :  { %p399_p3 = scmp.lt.u32.totalorder %s395_s8, %s679_s4 }
  0x28   :  { %p401_p4 = pnand %p399_p3, %p396_p2 }
  0x2a   :  { %404 = shalt.err (!%p401_p4)
}
  0x2b   :  { %s405_s15 = scalar_lea.vmem %s51_s28, 1536  ;;  %p410_p6 = scmp.lt.s32.totalorder %s51_s28, %s51_s28 }
  0x2c   :  { %p406_p5 = scmp.ne.s32.totalorder %s51_s28, %s405_s15  ;;  %p411_p7 = scmp.lt.s32.totalorder %s405_s15, %s405_s15 }
  0x2e   :  { %p412_p8 = por %p411_p7, %p410_p6 }
  0x30   :  { %p413_p9 = pnand %p412_p8, %p406_p5 }
  0x32   :  { %416 = shalt.err (!%p413_p9)
}
  0x33   :  { %56 = dma.hbm_to_vmem [thread:$0]  %s679_s4, 1536, %s51_s28, [#allocation6], %s471_s13, %s471_s13, %s472_s14  }
  0x34   :  { %461 = dma.done.wait [#allocation3], 1536  }
  0x35   :  { %462 = vsyncadd [#allocation3], 4294965760 }
  0x36   :  { %463 = dma.done.wait [#allocation6], 3072  }
  0x37   :  { %464 = vsyncadd [#allocation6], 4294964224  ;;  %v474_v0 = vmov 0   ;;  %v105_v1 = vld [vmem:[%s677_s2 + $0x8] sm:$0xff]  ;;  %v104_v2 = vld [vmem:[%s677_s2] sm:$0xff]  ;;  %vm186_vm0 = vcmask 0  }
  0x38   :  { %350 = vset.pattern.permute.xlu1 %v474_v0  ;;  %349 = vset.pattern.permute.xlu0 %v474_v0  ;;  %v225_v3 = vld [vmem:[%s680_s5 + $0x8] sm:$0xff]  ;;  %v224_v4 = vld [vmem:[%s680_s5] sm:$0xff]  ;;  %v226_v5 = vld [vmem:[%s680_s5 + $0x10] sm:$0xff]  ;;  %s476_s12 = smov [#allocation9]  }
  0x39   :  { %117 = vperm.xlu1 %350, %v105_v1   ;;  %112 = vperm.xlu0 %349, %v104_v2   ;;  %v106_v6 = vld [vmem:[%s677_s2 + $0x10] sm:$0xff]  ;;  %v227_v7 = vld [vmem:[%s680_s5 + $0x18] sm:$0xff]  ;;  %v228_v9 = vld [vmem:[%s680_s5 + $0x20] sm:$0xff]  ;;  %s323_s15 = sshll.u32 %s476_s12, 4  ;;  %s642_s15 = int_to_ptr.vmem [resolvable:$true] %s323_s15 }
  0x3a   :  { %v107_v8 = vld [vmem:[%s677_s2 + $0x18] sm:$0xff]  ;;  %v108_v10 = vld [vmem:[%s677_s2 + $0x20] sm:$0xff]  ;;  %v229_v11 = vld [vmem:[%s680_s5 + $0x28] sm:$0xff] }
  0x3b   :  { %v109_v12 = vld [vmem:[%s677_s2 + $0x28] sm:$0xff]  ;;  %v70_v13 = vld [vmem:[%s675_s0 + $0x10] sm:$0xff]  ;;  %v68_v15 = vld [vmem:[%s675_s0] sm:$0xff] }
  0x3c   :  { %v82_v14 = vld [vmem:[#allocation2 + $0x10] sm:$0xff]  ;;  %v69_v16 = vld [vmem:[%s675_s0 + $0x8] sm:$0xff]  ;;  %v80_v17 = vld [vmem:[#allocation2] sm:$0xff] }
  0x3d   :  { %237 = vperm.xlu1 %350, %v225_v3   ;;  %232 = vperm.xlu0 %349, %v224_v4   ;;  %v81_v18 = vld [vmem:[#allocation2 + $0x8] sm:$0xff]  ;;  %v71_v19 = vld [vmem:[%s675_s0 + $0x18] sm:$0xff]  ;;  %v94_v21 = vsub.f32 %v70_v13, %v82_v14  ;;  %v92_v22 = vsub.f32 %v68_v15, %v80_v17  ;;  %v190_v24 = vld [vmem:[#allocation5 + $0x10] sm:$0xff] }
  0x3e   :  { %v83_v20 = vld [vmem:[#allocation2 + $0x18] sm:$0xff]  ;;  %v93_v23 = vsub.f32 %v69_v16, %v81_v18  ;;  %v188_v25 = vld [vmem:[#allocation5] sm:$0xff]  ;;  %v202_v27 = vld [vmem:[#allocation7 + $0x10] sm:$0xff] }
  0x3f   :  { %v200_v26 = vld [vmem:[#allocation7] sm:$0xff]  ;;  %v189_v28 = vld [vmem:[#allocation5 + $0x8] sm:$0xff]  ;;  %v95_v31 = vsub.f32 %v71_v19, %v83_v20  ;;  %v191_v33 = vld [vmem:[#allocation5 + $0x18] sm:$0xff]  ;;  %v214_v41 = vsub.f32 %v190_v24, %v202_v27 }
  0x40   :  { %v201_v29 = vld [vmem:[#allocation7 + $0x8] sm:$0xff]  ;;  %v203_v37 = vld [vmem:[#allocation7 + $0x18] sm:$0xff]  ;;  %v212_v38 = vsub.f32 %v188_v25, %v200_v26  ;;  %v72_v39 = vld [vmem:[%s675_s0 + $0x20] sm:$0xff] }
  0x41   :  { %242 = vperm.xlu1 %350, %v226_v5   ;;  %122 = vperm.xlu0 %349, %v106_v6   ;;  %v84_v40 = vld [vmem:[#allocation2 + $0x20] sm:$0xff]  ;;  %v213_v42 = vsub.f32 %v189_v28, %v201_v29  ;;  %v73_v43 = vld [vmem:[%s675_s0 + $0x28] sm:$0xff]  ;;  %v215_v50 = vsub.f32 %v191_v33, %v203_v37  ;;  %v194_v60 = vld [vmem:[#allocation5 + $0x30] sm:$0xff] }
  0x42   :  { %v85_v44 = vld [vmem:[#allocation2 + $0x28] sm:$0xff]  ;;  %v192_v48 = vld [vmem:[#allocation5 + $0x20] sm:$0xff]  ;;  %v96_v54 = vsub.f32 %v72_v39, %v84_v40  ;;  %v206_v61 = vld [vmem:[#allocation7 + $0x30] sm:$0xff] }
  0x43   :  { %v204_v49 = vld [vmem:[#allocation7 + $0x20] sm:$0xff]  ;;  %v193_v53 = vld [vmem:[#allocation5 + $0x28] sm:$0xff]  ;;  %v97_v59 = vsub.f32 %v73_v43, %v85_v44  ;;  %v74_v1 = vld [vmem:[%s675_s0 + $0x30] sm:$0xff]  ;;  %v218_v14 = vsub.f32 %v194_v60, %v206_v61 }
  0x44   :  { %v205_v58 = vld [vmem:[#allocation7 + $0x28] sm:$0xff]  ;;  %v216_v0 = vsub.f32 %v192_v48, %v204_v49  ;;  %v86_v2 = vld [vmem:[#allocation2 + $0x30] sm:$0xff]  ;;  %v195_v5 = vld [vmem:[#allocation5 + $0x38] sm:$0xff] }
  0x45   :  { %247 = vperm.xlu1 %350, %v227_v7   ;;  %127 = vperm.xlu0 %349, %v107_v8   ;;  %v75_v6 = vld [vmem:[%s675_s0 + $0x38] sm:$0xff]  ;;  %v196_v15 = vld [vmem:[#allocation5 + $0x40] sm:$0xff]  ;;  %v98_v20 = vsub.f32 %v74_v1, %v86_v2  ;;  %v77_v27 = vld [vmem:[%s675_s0 + $0x48] sm:$0xff] }
  0x46   :  { %v87_v7 = vld [vmem:[#allocation2 + $0x38] sm:$0xff]  ;;  %v208_v16 = vld [vmem:[#allocation7 + $0x40] sm:$0xff]  ;;  %v89_v28 = vld [vmem:[#allocation2 + $0x48] sm:$0xff] }
  0x47   :  { %v207_v13 = vld [vmem:[#allocation7 + $0x38] sm:$0xff]  ;;  %v99_v26 = vsub.f32 %v75_v6, %v87_v7  ;;  %v220_v33 = vsub.f32 %v196_v15, %v208_v16  ;;  %v209_v39 = vld [vmem:[#allocation7 + $0x48] sm:$0xff]  ;;  %v90_v48 = vld [vmem:[#allocation2 + $0x50] sm:$0xff] }
  0x49   :  { %252 = vperm.xlu1 %350, %v228_v9   ;;  %132 = vperm.xlu0 %349, %v108_v10   ;;  %v217_v10 = vsub.f32 %v193_v53, %v205_v58  ;;  %v79_v53 = vld [vmem:[%s675_s0 + $0x58] sm:$0xff] }
  0x4d   :  { %257 = vperm.xlu1 %350, %v229_v11   ;;  %137 = vperm.xlu0 %349, %v109_v12  }
  0xb8   :  { %v118_v30 = vpop.permute.xlu1 %117  ;;  %v113_v32 = vpop.permute.xlu0 %112 }
  0xb9   :  { %v142_v34 = vmul.f32 %v118_v30, %v94_v21  ;;  %v140_v35 = vmul.f32 %v113_v32, %v92_v22  ;;  %v141_v36 = vmul.f32 %v113_v32, %v93_v23  ;;  %v143_v55 = vmul.f32 %v118_v30, %v95_v31  ;;  %v76_v21 = vld [vmem:[%s675_s0 + $0x40] sm:$0xff]  ;;  %v197_v32 = vld [vmem:[#allocation5 + $0x48] sm:$0xff] }
  0xba   :  { %v88_v22 = vld [vmem:[#allocation2 + $0x40] sm:$0xff]  ;;  %v219_v31 = vsub.f32 %v195_v5, %v207_v13  ;;  %v211_v5 = vld [vmem:[#allocation7 + $0x58] sm:$0xff] }
  0xbb   :  { %v154_v45 = vmul.f32 %v142_v34, %v142_v34  ;;  %v152_v46 = vmul.f32 %v140_v35, %v140_v35  ;;  %v153_v47 = vmul.f32 %v141_v36, %v141_v36  ;;  %v155_v17 = vmul.f32 %v143_v55, %v143_v55 }
  0xbc   :  { %v238_v51 = vpop.permute.xlu1 %237  ;;  %v233_v52 = vpop.permute.xlu0 %232  ;;  %v100_v40 = vsub.f32 %v76_v21, %v88_v22 }
  0xbd   :  { %v164_v56 = vadd.f32 %v153_v47, %v152_v46  ;;  %v260_v57 = vmul.f32 %v233_v52, %v212_v38  ;;  %v262_v62 = vmul.f32 %v238_v51, %v214_v41  ;;  %v261_v63 = vmul.f32 %v233_v52, %v213_v42  ;;  %v198_v41 = vld [vmem:[#allocation5 + $0x50] sm:$0xff] }
  0xbe   :  { %v263_v8 = vmul.f32 %v238_v51, %v215_v50  ;;  %v210_v42 = vld [vmem:[#allocation7 + $0x50] sm:$0xff]  ;;  %v101_v46 = vsub.f32 %v77_v27, %v89_v28 }
  0xbf   :  { %v165_v3 = vadd.f32 %v164_v56, %v154_v45  ;;  %v272_v4 = vmul.f32 %v260_v57, %v260_v57  ;;  %v273_v9 = vmul.f32 %v261_v63, %v261_v63  ;;  %v274_v23 = vmul.f32 %v262_v62, %v262_v62  ;;  %v78_v47 = vld [vmem:[%s675_s0 + $0x50] sm:$0xff]  ;;  %s475_s0 = smov [#allocation8]  }
  0xc0   :  { %v243_v11 = vpop.permute.xlu1 %242  ;;  %v123_v12 = vpop.permute.xlu0 %122  ;;  %v275_v34 = vmul.f32 %v263_v8, %v263_v8  ;;  %v221_v57 = vsub.f32 %v197_v32, %v209_v39  ;;  %v222_v58 = vsub.f32 %v198_v41, %v210_v42  ;;  %s313_s10 = sshll.u32 %s475_s0, 4  ;;  %s314_s10 = int_to_ptr.vmem [resolvable:$true] %s313_s10 }
  0xc1   :  { %v144_v18 = vmul.f32 %v123_v12, %v96_v54  ;;  %v145_v19 = vmul.f32 %v123_v12, %v97_v59  ;;  %v284_v24 = vadd.f32 %v273_v9, %v272_v4  ;;  %v264_v25 = vmul.f32 %v243_v11, %v216_v0  ;;  %v91_v54 = vld [vmem:[#allocation2 + $0x58] sm:$0xff]  ;;  %s417_s27 = scalar_lea.vmem %s314_s10, 16  ;;  %s421_s16 = scalar_lea.vmem %s314_s10, 32 }
  0xc2   :  { %v166_v30 = vadd.f32 %v165_v3, %v155_v17  ;;  %v265_v36 = vmul.f32 %v243_v11, %v217_v10  ;;  %v102_v0 = vsub.f32 %v78_v47, %v90_v48  ;;  %v199_v4 = vld [vmem:[#allocation5 + $0x58] sm:$0xff]  ;;  %v103_v6 = vsub.f32 %v79_v53, %v91_v54  ;;  %p418_p10 = scmp.ne.s32.totalorder %s314_s10, %s417_s27  ;;  %p422_p11 = scmp.lt.s32.totalorder %s314_s10, %s314_s10 }
  0xc3   :  { %v156_v29 = vmul.f32 %v144_v18, %v144_v18  ;;  %v285_v35 = vadd.f32 %v284_v24, %v274_v23  ;;  %v157_v43 = vmul.f32 %v145_v19, %v145_v19  ;;  %v276_v49 = vmul.f32 %v264_v25, %v264_v25  ;;  %p423_p12 = scmp.lt.s32.totalorder %s421_s16, %s417_s27 }
  0xc4   :  { %v248_v37 = vpop.permute.xlu1 %247  ;;  %v128_v38 = vpop.permute.xlu0 %127  ;;  %v277_v59 = vmul.f32 %v265_v36, %v265_v36  ;;  %v223_v16 = vsub.f32 %v199_v4, %v211_v5 }
  0xc5   :  { %v167_v44 = vadd.f32 %v166_v30, %v156_v29  ;;  %v146_v45 = vmul.f32 %v128_v38, %v98_v20  ;;  %v286_v50 = vadd.f32 %v285_v35, %v275_v34  ;;  %v266_v51 = vmul.f32 %v248_v37, %v218_v14  ;;  %p424_p13 = por %p423_p12, %p422_p11 }
  0xc6   :  { %v147_v52 = vmul.f32 %v128_v38, %v99_v26  ;;  %v267_v61 = vmul.f32 %v248_v37, %v219_v31 }
  0xc7   :  { %v168_v55 = vadd.f32 %v167_v44, %v157_v43  ;;  %v158_v56 = vmul.f32 %v146_v45, %v146_v45  ;;  %v287_v60 = vadd.f32 %v286_v50, %v276_v49  ;;  %v278_v8 = vmul.f32 %v266_v51, %v266_v51  ;;  %p425_p0 = pnand %p424_p13, %p418_p10 }
  0xc8   :  { %v253_v62 = vpop.permute.xlu1 %252  ;;  %v133_v63 = vpop.permute.xlu0 %132  ;;  %v159_v1 = vmul.f32 %v147_v52, %v147_v52  ;;  %v279_v13 = vmul.f32 %v267_v61, %v267_v61 }
  0xc9   :  { %v169_v2 = vadd.f32 %v168_v55, %v158_v56  ;;  %v148_v3 = vmul.f32 %v133_v63, %v100_v40  ;;  %v288_v7 = vadd.f32 %v287_v60, %v277_v59  ;;  %v268_v9 = vmul.f32 %v253_v62, %v220_v33 }
  0xca   :  { %v149_v10 = vmul.f32 %v133_v63, %v101_v46  ;;  %v269_v15 = vmul.f32 %v253_v62, %v221_v57 }
  0xcb   :  { %v170_v11 = vadd.f32 %v169_v2, %v159_v1  ;;  %v160_v12 = vmul.f32 %v148_v3, %v148_v3  ;;  %v289_v14 = vadd.f32 %v288_v7, %v278_v8  ;;  %v280_v23 = vmul.f32 %v268_v9, %v268_v9 }
  0xcc   :  { %v258_v17 = vpop.permute.xlu1 %257  ;;  %v138_v18 = vpop.permute.xlu0 %137  ;;  %v161_v19 = vmul.f32 %v149_v10, %v149_v10  ;;  %v281_v28 = vmul.f32 %v269_v15, %v269_v15 }
  0xcd   :  { %v171_v20 = vadd.f32 %v170_v11, %v160_v12  ;;  %v150_v21 = vmul.f32 %v138_v18, %v102_v0  ;;  %v290_v22 = vadd.f32 %v289_v14, %v279_v13  ;;  %v270_v24 = vmul.f32 %v258_v17, %v222_v58 }
  0xce   :  { %v151_v25 = vmul.f32 %v138_v18, %v103_v6  ;;  %v271_v30 = vmul.f32 %v258_v17, %v223_v16 }
  0xcf   :  { %v172_v26 = vadd.f32 %v171_v20, %v161_v19  ;;  %v162_v27 = vmul.f32 %v150_v21, %v150_v21  ;;  %v291_v29 = vadd.f32 %v290_v22, %v280_v23  ;;  %v282_v34 = vmul.f32 %v270_v24, %v270_v24 }
  0xd0   :  { %v163_v31 = vmul.f32 %v151_v25, %v151_v25  ;;  %v283_v36 = vmul.f32 %v271_v30, %v271_v30 }
  0xd1   :  { %v173_v32 = vadd.f32 %v172_v26, %v162_v27  ;;  %v292_v33 = vadd.f32 %v291_v29, %v281_v28 }
  0xd3   :  { %v174_v35 = vadd.f32 %v173_v32, %v163_v31  ;;  %v293_v37 = vadd.f32 %v292_v33, %v282_v34 }
  0xd5   :  { %175 = vadd.xlane.f32.xlu0 %v174_v35  ;;  %v294_v38 = vadd.f32 %v293_v37, %v283_v36 }
  0xd7   :  { %295 = vadd.xlane.f32.xlu1 %v294_v38 }
 0x162   :  { %v176_v39 = vpop.xlane.xlu0 %175 }
 0x163   :  { %v177_v40 = vrot.slane %v176_v39, 4 }
 0x164   :  { %v296_v42 = vpop.xlane.xlu1 %295 }
 0x165   :  { %v178_v41 = vadd.f32 %v177_v40, %v176_v39  ;;  %v297_v43 = vrot.slane %v296_v42, 4 }
 0x167   :  { %v179_v44 = vrot.slane %v178_v41, 2  ;;  %v298_v45 = vadd.f32 %v297_v43, %v296_v42 }
 0x169   :  { %v180_v46 = vadd.f32 %v179_v44, %v178_v41  ;;  %v299_v47 = vrot.slane %v298_v45, 2 }
 0x16b   :  { %v181_v48 = vrot.slane %v180_v46, 1  ;;  %v300_v49 = vadd.f32 %v299_v47, %v298_v45 }
 0x16d   :  { %v182_v50 = vadd.f32 %v181_v48, %v180_v46  ;;  %v301_v51 = vrot.slane %v300_v49, 1 }
 0x16f   :  { %337 = vpush %v182_v50  ;;  %v302_v52 = vadd.f32 %v301_v51, %v300_v49 }
 0x171   :  { %339 = vpush %v302_v52 }
 0x1a0   :  { %s338_s11 = spop %337 }
 0x1a1   :  { %v184_v53 = vstv %s338_s11 }
 0x1a2   :  { %v185_v54 = vmul.f32 4.0690105e-05, %v184_v53  ;;  %s340_s1 = spop %339 }
 0x1a3   :  { %v304_v55 = vstv %s340_s1 }
 0x1a4   :  { %187 = vst.msk [vmem:[#allocation8] sm:$0x1] %vm186_vm0, %v185_v54  ;;  %v305_v56 = vmul.f32 4.0690105e-05, %v304_v55 }
 0x1a5   :  { %428 = shalt.err (!%p425_p0)
}
 0x1a6   :  { %s429_s19 = scalar_lea.hbm %s681_s6, 16 }
 0x1a7   :  { %p430_p1 = scmp.ne.s32.totalorder %s681_s6, %s429_s19  ;;  %p433_p2 = scmp.lt.u32.totalorder %s429_s19, %s681_s6 }
 0x1a9   :  { %p435_p3 = pnand %p433_p2, %p430_p1 }
 0x1ab   :  { %438 = shalt.err (!%p435_p3)
}
 0x1ac   :  { %316 = dma.vmem_to_hbm [thread:$0]  %s314_s10, 16, %s681_s6, [#allocation4]   ;;  %306 = vst.msk [vmem:[#allocation9] sm:$0x1] %vm186_vm0, %v305_v56 }
 0x1ad   :  { %s439_s14 = scalar_lea.vmem %s642_s15, 16  ;;  %s443_s22 = scalar_lea.vmem %s642_s15, 32 }
 0x1ae   :  { %p440_p4 = scmp.ne.s32.totalorder %s642_s15, %s439_s14  ;;  %p444_p5 = scmp.lt.s32.totalorder %s642_s15, %s642_s15 }
 0x1af   :  { %p445_p6 = scmp.lt.s32.totalorder %s443_s22, %s439_s14 }
 0x1b1   :  { %p446_p7 = por %p445_p6, %p444_p5 }
 0x1b3   :  { %p447_p8 = pnand %p446_p7, %p440_p4 }
 0x1b5   :  { %450 = shalt.err (!%p447_p8)
}
 0x1b6   :  { %s451_s3 = scalar_lea.hbm %s682_s7, 16 }
 0x1b7   :  { %p452_p9 = scmp.ne.s32.totalorder %s682_s7, %s451_s3  ;;  %p455_p10 = scmp.lt.u32.totalorder %s451_s3, %s682_s7 }
 0x1b9   :  { %p457_p11 = pnand %p455_p10, %p452_p9 }
 0x1bb   :  { %460 = shalt.err (!%p457_p11)
}
 0x1bc   :  { %326 = dma.vmem_to_hbm [thread:$0]  %s642_s15, 16, %s682_s7, [#allocation10]  }
 0x1bd   :  { %465 = dma.done.wait [#allocation4], 16  }
 0x1be   :  { %466 = vsyncadd [#allocation4], 4294967280 }
 0x1bf   :  { %467 = dma.done.wait [#allocation10], 16  }
 0x1c0   :  { %468 = vsyncadd [#allocation10], 4294967280 }
 0x1c1   :  { %333 = vsyncpa [#allocation3], 1 }
 0x1c2   :  { %334 = vsyncpa [#allocation6], 1 }
 0x1c3   :  { %335 = vsyncpa [#allocation4], 1 }
 0x1c4   :  { %336 = vsyncpa [#allocation10], 1 }

</bundles_post_ra>
